<compile_context>
chip_gen: v7x
topology: tpu7x:2x2x1
jax: 0.10.0
libtpu: 0.0.40
codegen_flags: <defaults>
</compile_context>

<pallas_src>
import math
import functools

import jax
import jax.numpy as jnp
from jax import lax
from jax.experimental import pallas as pl
from jax.experimental.pallas import tpu as pltpu


def _vmem_budget_bytes():
    """Generation-aware VMEM budget (v5e/v6e: 128 MiB, v7x: 64 MiB physical)."""
    cap = 64 * 1024 * 1024
    try:
        info_fn = getattr(pltpu, "get_tpu_info", None)
        if info_fn is not None:
            cap = int(info_fn().vmem_capacity_bytes)
    except Exception:
        pass  # fall back to the most conservative (v7x) capacity
    return (cap * 3) // 4  # leave headroom for compiler-internal scratch


def _pick_tile_m(M, Din, Dout, n_mats, budget_bytes):
    """Largest row tile that (a) divides M, (b) keeps the double-buffered
    working set (n_mats x [x tile + out tile + weight], f32) under budget and
    (c) when possible leaves >= 2 row blocks so the "parallel" grid axis can
    shard across v7x's two TensorCores."""
    def fits(tm):
        need = 4 * n_mats * (2 * tm * (Din + Dout) + 2 * Din * Dout)
        return need <= budget_bytes

    cands = [tm for tm in (1024, 512, 256, 128, 64, 32, 16, 8) if M % tm == 0]
    fitting = [tm for tm in cands if fits(tm)]
    for tm in fitting:              # largest fitting tile with >= 2 row blocks
        if M // tm >= 2:
            return tm
    if fitting:
        return fitting[0]
    if cands:                       # nothing fits budget: smallest dividing tile
        return cands[-1]
    # M % 8 != 0: single full-extent block (always a legal block shape).
    # TODO(synk): pad M up to a multiple of 8 instead for large ragged M.
    return M


# ---------------------------------------------------------------------------
# Kernel 1: fused Q/K/V projection (three MXU matmuls per grid step, pipelined)
# ---------------------------------------------------------------------------
def _qkv_proj_kernel(xq_ref, xk_ref, xv_ref, wq_ref, wk_ref, wv_ref,
                     oq_ref, ok_ref, ov_ref):
    # x tiles: (TM, Din); weights pre-transposed to (Din, Dout) in the wrapper
    # (one-time XLA transpose -> no per-grid-step XLU transpose in here).
    oq_ref[...] = jnp.dot(xq_ref[...], wq_ref[...],
                          preferred_element_type=jnp.float32).astype(oq_ref.dtype)
    ok_ref[...] = jnp.dot(xk_ref[...], wk_ref[...],
                          preferred_element_type=jnp.float32).astype(ok_ref.dtype)
    ov_ref[...] = jnp.dot(xv_ref[...], wv_ref[...],
                          preferred_element_type=jnp.float32).astype(ov_ref.dtype)


def qkv_projection(q2d, k2d, v2d, wq_t, wk_t, wv_t, budget):
    # NOTE: the reviewer's "concatenate wq/wk/wv into one wide matmul" trick
    # only applies when Q == K == V; this module takes distinct Q/K/V, so we
    # keep three N=Dout matmuls per step with all three weights resident.
    M, Din = q2d.shape
    Dout = wq_t.shape[1]
    tm = _pick_tile_m(M, Din, Dout, n_mats=3, budget_bytes=(budget * 2) // 3)
    x_spec = pl.BlockSpec((tm, Din), lambda i: (i, 0))
    w_spec = pl.BlockSpec((Din, Dout), lambda i: (0, 0))
    o_spec = pl.BlockSpec((tm, Dout), lambda i: (i, 0))
    out_sds = jax.ShapeDtypeStruct((M, Dout), q2d.dtype)
    return pl.pallas_call(
        _qkv_proj_kernel,
        out_shape=(out_sds, out_sds, out_sds),
        grid=(M // tm,),
        in_specs=[x_spec, x_spec, x_spec, w_spec, w_spec, w_spec],
        out_specs=(o_spec, o_spec, o_spec),
        compiler_params=pltpu.CompilerParams(
            dimension_semantics=("parallel",),
            vmem_limit_bytes=budget),
    )(q2d, k2d, v2d, wq_t, wk_t, wv_t)


# ---------------------------------------------------------------------------
# Kernel 2: tiled linear (output projection), pipelined over row tiles
# ---------------------------------------------------------------------------
def _linear_kernel(x_ref, w_ref, o_ref):
    o_ref[...] = jnp.dot(x_ref[...], w_ref[...],
                         preferred_element_type=jnp.float32).astype(o_ref.dtype)


def linear(x2d, w_t, budget):
    M, Din = x2d.shape
    Dout = w_t.shape[1]
    tm = _pick_tile_m(M, Din, Dout, n_mats=1, budget_bytes=(budget * 2) // 3)
    return pl.pallas_call(
        _linear_kernel,
        out_shape=jax.ShapeDtypeStruct((M, Dout), x2d.dtype),
        grid=(M // tm,),
        in_specs=[pl.BlockSpec((tm, Din), lambda i: (i, 0)),
                  pl.BlockSpec((Din, Dout), lambda i: (0, 0))],
        out_specs=pl.BlockSpec((tm, Dout), lambda i: (i, 0)),
        compiler_params=pltpu.CompilerParams(
            dimension_semantics=("parallel",),
            vmem_limit_bytes=budget),
    )(x2d, w_t)


# ---------------------------------------------------------------------------
# Kernel 3: masked attention, one (batch, head) pair per grid step.
#   q/k/v/y refs: (T, dh)   att ref: (T, T)
# ---------------------------------------------------------------------------
def _mha_attn_kernel(q_ref, k_ref, v_ref, y_ref, att_ref, *, scale):
    q = q_ref[...] * scale            # pre-scale q once: T*dh mults, not T*T
    k = k_ref[...]
    v = v_ref[...]
    T = q.shape[0]

    # scores = (q*scale) @ k.T : contract last dims of both (no transpose)
    s = lax.dot_general(q, k, (((1,), (1,)), ((), ())),
                        preferred_element_type=jnp.float32)
    row = lax.broadcasted_iota(jnp.int32, (T, T), 0)
    col = lax.broadcasted_iota(jnp.int32, (T, T), 1)
    # -inf fill is NaN-safe here because the causal diagonal is always kept.
    s = jnp.where(col <= row, s, -jnp.inf)
    m = jnp.max(s, axis=-1, keepdims=True)
    e = jnp.exp(s - m)
    denom = jnp.sum(e, axis=-1, keepdims=True)
    # exact reciprocal keeps att bit-comparable to the reference; approx=True
    # would move it fully onto the otherwise-idle EUP slot.
    p = e * pl.reciprocal(denom, approx=False)

    att_ref[...] = p.astype(att_ref.dtype)          # attn_drop(p=0) == identity
    y_ref[...] = jnp.dot(p.astype(v.dtype), v,
                         preferred_element_type=jnp.float32).astype(y_ref.dtype)
    # TODO(synk): for very large T, add a query-row grid axis with an online
    # softmax so the (T, T) block shrinks further; the module API returns the
    # full (B, H, T, T) attention matrix, so it is still materialized in HBM.
    # TODO(synk): only the default causal mask (mask=None) path is implemented;
    # arbitrary user-supplied masks are not.


# ---------------------------------------------------------------------------
# Wrapper reproducing MultiHeadAttention.forward (mask=None -> causal)
# ---------------------------------------------------------------------------
def multi_head_attention(Q, K, V, params, num_heads):
    B, T, D = Q.shape
    assert D % num_heads == 0
    dh = D // num_heads
    scale = 1.0 / math.sqrt(D)        # module uses 1/sqrt(dim), not 1/sqrt(Dh)
    M = B * T
    budget = _vmem_budget_bytes()

    # one-time XLA-side weight transposes (PyTorch (out,in) -> (in,out))
    wq_t = params["query"].T
    wk_t = params["key"].T
    wv_t = params["value"].T
    wp_t = params["proj"].T

    # fused Q/K/V projection: one pipelined pallas_call, each input read once
    q2d, k2d, v2d = qkv_projection(
        Q.reshape(M, D), K.reshape(M, D), V.reshape(M, D),
        wq_t, wk_t, wv_t, budget)

    # one-time head split (amortized XLA relayout) so the attention kernel
    # sees lane-dense (T, dh) blocks and never does sub-128-lane slicing.
    def split_heads(x2d):
        return x2d.reshape(B, T, num_heads, dh).transpose(0, 2, 1, 3)

    q = split_heads(q2d)
    k = split_heads(k2d)
    v = split_heads(v2d)

    kern = functools.partial(_mha_attn_kernel, scale=scale)
    head_spec = pl.BlockSpec((None, None, T, dh), lambda b, h: (b, h, 0, 0))
    att_spec = pl.BlockSpec((None, None, T, T), lambda b, h: (b, h, 0, 0))
    y4, att = pl.pallas_call(
        kern,
        out_shape=(jax.ShapeDtypeStruct((B, num_heads, T, dh), Q.dtype),
                   jax.ShapeDtypeStruct((B, num_heads, T, T), jnp.float32)),
        grid=(B, num_heads),
        in_specs=[head_spec, head_spec, head_spec],
        out_specs=(head_spec, att_spec),
        compiler_params=pltpu.CompilerParams(
            dimension_semantics=("parallel", "parallel"),
            vmem_limit_bytes=budget),
    )(q, k, v)

    # one-time head merge, then output projection (resid_drop p=0 == identity)
    y = y4.transpose(0, 2, 1, 3).reshape(M, D)
    y = linear(y, wp_t, budget).reshape(B, T, D)
    return y, att


# ---------------------------------------------------------------------------
# Pure-JAX reference for correctness checking
# ---------------------------------------------------------------------------
def reference_mha(Q, K, V, params, num_heads):
    B, T, D = Q.shape
    Dh = D // num_heads

    def lin(x, w):
        return jnp.einsum("btd,od->bto", x, w)

    def split(x):
        return x.reshape(B, T, num_heads, Dh).transpose(0, 2, 1, 3)

    q = split(lin(Q, params["query"]))
    k = split(lin(K, params["key"]))
    v = split(lin(V, params["value"]))
    att = jnp.einsum("bhid,bhjd->bhij", q, k) * (1.0 / math.sqrt(D))
    mask = jnp.tril(jnp.ones((T, T), dtype=jnp.float32)).reshape(1, 1, T, T)
    att = jnp.where(mask == 0, -jnp.inf, att)
    att = jax.nn.softmax(att, axis=-1)
    y = att @ v
    y = y.transpose(0, 2, 1, 3).reshape(B, T, D)
    y = lin(y, params["proj"])
    return y, att


if __name__ == "__main__":
    B, T, D = 2, 8, 32
    num_heads = 4
    # dropout = 0.0 (identity); bias = False, as in the module defaults.

    key = jax.random.PRNGKey(0)
    kq, kk, kv, kw1, kw2, kw3, kw4 = jax.random.split(key, 7)

    Q = jax.random.normal(kq, (B, T, D), dtype=jnp.float32)
    K = jax.random.normal(kk, (B, T, D), dtype=jnp.float32)
    V = jax.random.normal(kv, (B, T, D), dtype=jnp.float32)

    # deterministic synthetic weights, PyTorch Linear layout (out, in)
    init_scale = 1.0 / math.sqrt(D)
    params = {
        "query": init_scale * jax.random.normal(kw1, (D, D), dtype=jnp.float32),
        "key": init_scale * jax.random.normal(kw2, (D, D), dtype=jnp.float32),
        "value": init_scale * jax.random.normal(kw3, (D, D), dtype=jnp.float32),
        "proj": init_scale * jax.random.normal(kw4, (D, D), dtype=jnp.float32),
    }

    y, att = multi_head_attention(Q, K, V, params, num_heads)
    jax.block_until_ready(y)
    jax.block_until_ready(att)

    y_ref, att_ref = reference_mha(Q, K, V, params, num_heads)
    assert y.shape == (B, T, D) and att.shape == (B, num_heads, T, T)
    assert jnp.allclose(y, y_ref, atol=1e-5, rtol=1e-5)
    assert jnp.allclose(att, att_ref, atol=1e-5, rtol=1e-5)

    print("KERNEL_OK")
</pallas_src>

<mosaic_0001>
module attributes {stable_mosaic.version = 11 : i64} {
  func.func @_qkv_proj_kernel(%arg0: i32, %arg1: memref<8x32xf32, #tpu.memory_space<vmem>>, %arg2: memref<8x32xf32, #tpu.memory_space<vmem>>, %arg3: memref<8x32xf32, #tpu.memory_space<vmem>>, %arg4: memref<32x32xf32, #tpu.memory_space<vmem>>, %arg5: memref<32x32xf32, #tpu.memory_space<vmem>>, %arg6: memref<32x32xf32, #tpu.memory_space<vmem>>, %arg7: memref<8x32xf32, #tpu.memory_space<vmem>>, %arg8: memref<8x32xf32, #tpu.memory_space<vmem>>, %arg9: memref<8x32xf32, #tpu.memory_space<vmem>>) attributes {dimension_semantics = [#tpu.dimension_semantics<parallel>], iteration_bounds = array<i64: 2>, scalar_prefetch = 0 : i64, scratch_operands = 0 : i64, tpu.core_type = #tpu.core_type<tc>, window_params = [{transform_indices = @transform_0, window_bounds = array<i64: 8, 32>}, {transform_indices = @transform_1, window_bounds = array<i64: 8, 32>}, {transform_indices = @transform_2, window_bounds = array<i64: 8, 32>}, {pipeline_mode = #tpu.pipeline_mode<synchronous>, transform_indices = @transform_3, window_bounds = array<i64: 32, 32>}, {pipeline_mode = #tpu.pipeline_mode<synchronous>, transform_indices = @transform_4, window_bounds = array<i64: 32, 32>}, {pipeline_mode = #tpu.pipeline_mode<synchronous>, transform_indices = @transform_5, window_bounds = array<i64: 32, 32>}, {transform_indices = @transform_6, window_bounds = array<i64: 8, 32>}, {transform_indices = @transform_7, window_bounds = array<i64: 8, 32>}, {transform_indices = @transform_8, window_bounds = array<i64: 8, 32>}]} {
    %c0 = arith.constant 0 : index
    %c0_0 = arith.constant 0 : index
    %0 = vector.load %arg1[%c0, %c0_0] : memref<8x32xf32, #tpu.memory_space<vmem>>, vector<8x32xf32>
    %c0_1 = arith.constant 0 : index
    %c0_2 = arith.constant 0 : index
    %1 = vector.load %arg4[%c0_1, %c0_2] : memref<32x32xf32, #tpu.memory_space<vmem>>, vector<32x32xf32>
    %cst = arith.constant dense<0.000000e+00> : vector<8x32xf32>
    %2 = tpu.matmul %0, %1, %cst {dimension_numbers = #tpu.dot_dimension_numbers<[1], [0], [0], [1], [0, 0, 1, 1], [], []>} : vector<8x32xf32>, vector<32x32xf32>, vector<8x32xf32> -> vector<8x32xf32>
    %c0_3 = arith.constant 0 : index
    %c0_4 = arith.constant 0 : index
    %3 = vector.load %arg7[%c0_3, %c0_4] : memref<8x32xf32, #tpu.memory_space<vmem>>, vector<8x32xf32>
    tpu.vector_store %arg7[%c0_3, %c0_4], %2 {strides = array<i32>} : memref<8x32xf32, #tpu.memory_space<vmem>>, vector<8x32xf32>,
    %c0_5 = arith.constant 0 : index
    %c0_6 = arith.constant 0 : index
    %4 = vector.load %arg2[%c0_5, %c0_6] : memref<8x32xf32, #tpu.memory_space<vmem>>, vector<8x32xf32>
    %c0_7 = arith.constant 0 : index
    %c0_8 = arith.constant 0 : index
    %5 = vector.load %arg5[%c0_7, %c0_8] : memref<32x32xf32, #tpu.memory_space<vmem>>, vector<32x32xf32>
    %cst_9 = arith.constant dense<0.000000e+00> : vector<8x32xf32>
    %6 = tpu.matmul %4, %5, %cst_9 {dimension_numbers = #tpu.dot_dimension_numbers<[1], [0], [0], [1], [0, 0, 1, 1], [], []>} : vector<8x32xf32>, vector<32x32xf32>, vector<8x32xf32> -> vector<8x32xf32>
    %c0_10 = arith.constant 0 : index
    %c0_11 = arith.constant 0 : index
    %7 = vector.load %arg8[%c0_10, %c0_11] : memref<8x32xf32, #tpu.memory_space<vmem>>, vector<8x32xf32>
    tpu.vector_store %arg8[%c0_10, %c0_11], %6 {strides = array<i32>} : memref<8x32xf32, #tpu.memory_space<vmem>>, vector<8x32xf32>,
    %c0_12 = arith.constant 0 : index
    %c0_13 = arith.constant 0 : index
    %8 = vector.load %arg3[%c0_12, %c0_13] : memref<8x32xf32, #tpu.memory_space<vmem>>, vector<8x32xf32>
    %c0_14 = arith.constant 0 : index
    %c0_15 = arith.constant 0 : index
    %9 = vector.load %arg6[%c0_14, %c0_15] : memref<32x32xf32, #tpu.memory_space<vmem>>, vector<32x32xf32>
    %cst_16 = arith.constant dense<0.000000e+00> : vector<8x32xf32>
    %10 = tpu.matmul %8, %9, %cst_16 {dimension_numbers = #tpu.dot_dimension_numbers<[1], [0], [0], [1], [0, 0, 1, 1], [], []>} : vector<8x32xf32>, vector<32x32xf32>, vector<8x32xf32> -> vector<8x32xf32>
    %c0_17 = arith.constant 0 : index
    %c0_18 = arith.constant 0 : index
    %11 = vector.load %arg9[%c0_17, %c0_18] : memref<8x32xf32, #tpu.memory_space<vmem>>, vector<8x32xf32>
    tpu.vector_store %arg9[%c0_17, %c0_18], %10 {strides = array<i32>} : memref<8x32xf32, #tpu.memory_space<vmem>>, vector<8x32xf32>,
    return
  }
  func.func @transform_0(%arg0: i32) -> (i32, i32) {
    %c0_i32 = arith.constant 0 : i32
    %c0_i32_0 = arith.constant 0 : i32
    return %arg0, %c0_i32 : i32, i32
  }
  func.func @transform_1(%arg0: i32) -> (i32, i32) {
    %c0_i32 = arith.constant 0 : i32
    %c0_i32_0 = arith.constant 0 : i32
    return %arg0, %c0_i32 : i32, i32
  }
  func.func @transform_2(%arg0: i32) -> (i32, i32) {
    %c0_i32 = arith.constant 0 : i32
    %c0_i32_0 = arith.constant 0 : i32
    return %arg0, %c0_i32 : i32, i32
  }
  func.func @transform_3(%arg0: i32) -> (i32, i32) {
    %c0_i32 = arith.constant 0 : i32
    %c0_i32_0 = arith.constant 0 : i32
    %c0_i32_1 = arith.constant 0 : i32
    return %c0_i32, %c0_i32_0 : i32, i32
  }
  func.func @transform_4(%arg0: i32) -> (i32, i32) {
    %c0_i32 = arith.constant 0 : i32
    %c0_i32_0 = arith.constant 0 : i32
    %c0_i32_1 = arith.constant 0 : i32
    return %c0_i32, %c0_i32_0 : i32, i32
  }
  func.func @transform_5(%arg0: i32) -> (i32, i32) {
    %c0_i32 = arith.constant 0 : i32
    %c0_i32_0 = arith.constant 0 : i32
    %c0_i32_1 = arith.constant 0 : i32
    return %c0_i32, %c0_i32_0 : i32, i32
  }
  func.func @transform_6(%arg0: i32) -> (i32, i32) {
    %c0_i32 = arith.constant 0 : i32
    %c0_i32_0 = arith.constant 0 : i32
    return %arg0, %c0_i32 : i32, i32
  }
  func.func @transform_7(%arg0: i32) -> (i32, i32) {
    %c0_i32 = arith.constant 0 : i32
    %c0_i32_0 = arith.constant 0 : i32
    return %arg0, %c0_i32 : i32, i32
  }
  func.func @transform_8(%arg0: i32) -> (i32, i32) {
    %c0_i32 = arith.constant 0 : i32
    %c0_i32_0 = arith.constant 0 : i32
    return %arg0, %c0_i32 : i32, i32
  }
}

</mosaic_0001>

<bundles_post_ra>
// kernel: tpu_custom_call.1
= control target key start
LH: loop header
LB: loop body
LE: loop exit
PB: predicated region body
PF: predicated region fallthrough
CT: control target
= control target key end

     0   :  { %s1944_s0 = inlined_call_operand.hbm [shape: f32[16,32], index: 0, kind: input, shape index: {}]   ;;  %s1945_s1 = inlined_call_operand.hbm [shape: f32[16,32], index: 1, kind: input, shape index: {}]   ;;  %s1946_s2 = inlined_call_operand.hbm [shape: f32[16,32], index: 2, kind: input, shape index: {}]   ;;  %s1947_s3 = inlined_call_operand.hbm [shape: f32[32,32], index: 3, kind: input, shape index: {}]   ;;  %s1948_s4 = inlined_call_operand.hbm [shape: f32[32,32], index: 4, kind: input, shape index: {}]   ;;  %s1949_s5 = inlined_call_operand.hbm [shape: f32[32,32], index: 5, kind: input, shape index: {}]   ;;  %s1950_s6 = inlined_call_operand.hbm [shape: f32[16,32], index: 6, kind: output, shape index: {0}]   ;;  %s1951_s7 = inlined_call_operand.hbm [shape: f32[16,32], index: 7, kind: output, shape index: {1}]   ;;  %s1952_s8 = inlined_call_operand.hbm [shape: f32[16,32], index: 8, kind: output, shape index: {2}]  }
   0x1   :  { %1979 = sst [smem:[#allocation28_spill]] %s1945_s1 }
   0x2   :  { %1980 = sst [smem:[#allocation29_spill]] %s1947_s3 }
   0x3   :  { %1981 = sst [smem:[#allocation30_spill]] %s1951_s7 }
   0x4   :  { %1982 = sst [smem:[#allocation31_spill]] %s1952_s8 }
   0x5   :  { %14 = vsyncpa [#allocation3], 0 }
   0x6   :  { %16 = vsyncpa [#allocation3 + $0x1], 0 }
   0x7   :  { %17 = vsyncpa [#allocation6], 0 }
   0x8   :  { %19 = vsyncpa [#allocation6 + $0x1], 0 }
   0x9   :  { %20 = vsyncpa [#allocation9], 0 }
   0xa   :  { %21 = vsyncpa [#allocation12], 0 }
   0xb   :  { %22 = vsyncpa [#allocation4], 0 }
   0xc   :  { %24 = vsyncpa [#allocation4 + $0x1], 0 }
   0xd   :  { %25 = vsyncpa [#allocation15], 0 }
   0xe   :  { %27 = vsyncpa [#allocation15 + $0x1], 0  ;;  %s1519_s27 = smov 0   ;;  %s1521_s28 = smov 0  }
   0xf   :  { %s1523_s29 = smov 0   ;;  %s1525_s30 = smov 0  }
  0x10 LB: > { %1983 = sst [smem:[#allocation23_spill]] %s1446_s27  ;;  %s1540_s9 = sadd.s32 4294967295, %s1458_s30   ;;  %s1458_s30 = sphi %s1525_s30, %s2022_s30   ;;  %s1454_s29 = sphi %s1523_s29, %s2026_s29   ;;  %s1450_s28 = sphi %s1521_s28, %s2025_s28   ;;  %s1446_s27 = sphi %s1519_s27, %s2024_s27  }
  0x11   : > { %1984 = sst [smem:[#allocation24_spill]] %s1458_s30  ;;  %s1954_s10 = sadd.s32 4294967294, %s1458_s30  }
  0x12   : > { %p53_p0 = scmp.ne.s32.totalorder %s1450_s28, %s1446_s27  ;;  %p1953_p1 = scmp.eq.s32.totalorder %s1540_s9, 0 }
  0x13   : > { %p198_p3 = scmp.eq.s32.totalorder %s1954_s10, 1  ;;  %p946_p5 = scmp.ge.s32.totalorder %s1458_s30, 1 }
  0x14   : > { %p1551_p4 = por %p1953_p1, %p53_p0  ;;  %p257_p7 = scmp.lt.s32.totalorder %s1458_s30, 3 }
  0x15   : > { %p1556_p6 = por %p198_p3, %p53_p0  ;;  %s1460_s14 = smov [#allocation8]  }
  0x16   : > { %s1985_s11 = scalar_select %p1551_p4, 1, 0 }
  0x17   : > { %s1986_s12 = scalar_select %p1556_p6, 1, 0 }
  0x18   : > { %p1561_p8 = pnand %p946_p5, %p257_p7  ;;  %s269_s15 = sshll.u32 %s1460_s14, 4  ;;  %s1565_s15 = int_to_ptr.vmem [resolvable:$true] %s269_s15 }
  0x19   : > { %1987 = sst [smem:[#allocation25_spill]] %s1986_s12  ;;  %s1577_s17 = sadd.s32 1, %s1458_s30  }
  0x1a   : > { %s1988_s13 = scalar_select %p1561_p8, 1, 0 }
  0x1b   : > { %p1068_p9 = pneg %p1561_p8  ;;  %1990 = sst [smem:[#allocation26_spill]] %s1577_s17 }
  0x1c   : > { %s40_s18 = sadd.s32 1, %s1454_s29  ;;  %s37_s19 = ssub.s32 %s1458_s30, %s1577_s17 }
  0x1d   : > { %p1572_p11 = pnand %p1068_p9, %p1953_p1  ;;  %s1991_s3 = sld [smem:[#allocation29_spill]] }
  0x1f   : > { %s1989_s16 = scalar_select %p1572_p11, 1, 0 }
  0x20   : > { %p1590_p13 = pneg %p1572_p11 }
  0x22   : > { %s1992_s25 = scalar_select %p1590_p13, 1, 0 }
  0x23   : > { %s1146_s22 = scalar_lea.hbm %s1991_s3, 512 }
  0x24   : > { %p1147_p12 = scmp.ne.s32.totalorder %s1991_s3, %s1146_s22  ;;  %p1153_p5 = scmp.lt.u32.totalorder %s1146_s22, %s1991_s3 }
  0x26   : > { %p1149_p0 = pnand %p1590_p13, %p1147_p12 }
  0x28   : > { %p1150_p3 = pneg %p1149_p0 }
  0x2a   : > { %p1155_p7 = pnand %p1153_p5, %p1150_p3 }
  0x2c   : > { %1158 = shalt.err (!%p1155_p7)
}
  0x2d   : > { %s1159_s20 = scalar_lea.vmem %s1565_s15, 512  ;;  %p1167_p2 = scmp.lt.s32.totalorder %s1565_s15, %s1565_s15 }
  0x2e   : > { %p1160_p9 = scmp.ne.s32.totalorder %s1565_s15, %s1159_s20  ;;  %p1168_p6 = scmp.lt.s32.totalorder %s1159_s20, %s1159_s20 }
  0x30   : > { %p1162_p10 = pnand %p1160_p9, %p1590_p13  ;;  %p1169_p12 = por %p1168_p6, %p1167_p2 }
  0x32   : > { %p1163_p1 = pneg %p1162_p10 }
  0x34   : > { %p1170_p0 = pnand %p1169_p12, %p1163_p1 }
  0x36   : > { %1173 = shalt.err (!%p1170_p0)
}
  0x37   : > { %s1957_s21 = smov 128   ;;  %s1959_s22 = smov 8  }
  0x38   : > { %1071 = dma.hbm_to_vmem [thread:$0]  (!%p1572_p11), %s1991_s3, 512, %s1565_s15, [#allocation9], %s1957_s21, %s1957_s21, %s1959_s22  }
  0x39   : > { %p38_p1 = scmp.eq.s32.totalorder %s37_s19, 0  ;;  %p47_p2 = scmp.ne.s32.totalorder %s1454_s29, %s1450_s28 }
  0x3a   : > { %p48_p6 = scmp.eq.s32.totalorder %s1458_s30, 0  ;;  %p1101_p10 = scmp.lt.s32.totalorder %s1458_s30, 2 }
  0x3b   : > { %s1619_s26 = scalar_select %p38_p1, %s1454_s29, %s40_s18  }
  0x3c   : > { %p49_p3 = por %p48_p6, %p47_p2  ;;  %p1994_p5 = scmp.eq.s32.totalorder %s1540_s9, 1 }
  0x3d   : > { %1993 = sst [smem:[#allocation27_spill]] %s1619_s26  ;;  %s1961_s20 = sand.u32 1, %s1454_s29  }
  0x3e   : > { %p1623_p7 = por %p1994_p5, %p47_p2  ;;  %s1629_s10 = sshll.u32 %s1458_s30, 7 }
  0x3f   : > { %s1633_s17 = sshll.u32 %s1961_s20, 3  ;;  %p1635_p9 = pnand %p1101_p10, %p49_p3 }
  0x40   : > { %s1995_s14 = scalar_select %p1623_p7, 1, 0 }
  0x41   : > { %s1996_s15 = scalar_select %p1635_p9, 1, 0 }
  0x42   : > { %s327_s18 = sand.u32 1, %s1458_s30   ;;  %s1997_s1 = sld [smem:[#allocation28_spill]] }
  0x43   : > { %s331_s21 = scalar_lea.vmem [#allocation5], %s1633_s17  ;;  %s1649_s20 = scalar_lea.sflag [#allocation6], %s327_s18 }
  0x44   : > { %s338_s22 = sshll.u32 %s331_s21, 4  ;;  %p1655_p0 = pneg %p1635_p9  ;;  %s1647_s22 = int_to_ptr.vmem [resolvable:$true] %s338_s22 }
  0x46   : > { %s1998_s26 = scalar_select %p1655_p0, 1, 0 }
  0x48   : > { %s1644_s24 = scalar_lea.hbm %s1997_s1, %s1629_s10  ;;  %s1179_s30 = scalar_lea.hbm %s1997_s1, 256 }
  0x49   : > { %s1174_s3 = scalar_lea.hbm %s1644_s24, 128  ;;  %p1180_p6 = scmp.lt.u32.totalorder %s1644_s24, %s1997_s1 }
  0x4a   : > { %p1175_p12 = scmp.ne.s32.totalorder %s1644_s24, %s1174_s3  ;;  %p1181_p10 = scmp.lt.u32.totalorder %s1179_s30, %s1174_s3 }
  0x4b   : > { %p1183_p5 = scmp.lt.u32.totalorder %s1174_s3, %s1644_s24 }
  0x4c   : > { %p1177_p1 = pnand %p1655_p0, %p1175_p12  ;;  %p1182_p3 = por %p1181_p10, %p1180_p6 }
  0x4e   : > { %p1178_p2 = pneg %p1177_p1  ;;  %p1184_p7 = por %p1183_p5, %p1182_p3 }
  0x50   : > { %p1185_p4 = pnand %p1184_p7, %p1178_p2 }
  0x52   : > { %1188 = shalt.err (!%p1185_p4)
}
  0x53   : > { %s1189_s18 = scalar_lea.vmem %s1647_s22, 128  ;;  %s1463_s19 = smov [#allocation5]  }
  0x54   : > { %p1190_p12 = scmp.ne.s32.totalorder %s1647_s22, %s1189_s18  ;;  %s1194_s23 = sshll.u32 %s1463_s19, 4  ;;  %s1195_s23 = int_to_ptr.vmem [resolvable:$false] %s1194_s23 }
  0x55   : > { %s1196_s12 = scalar_lea.vmem %s1195_s23, 256  ;;  %p1197_p11 = scmp.lt.s32.totalorder %s1647_s22, %s1195_s23 }
  0x56   : > { %p1192_p1 = pnand %p1190_p12, %p1655_p0  ;;  %p1198_p13 = scmp.lt.s32.totalorder %s1196_s12, %s1189_s18 }
  0x58   : > { %p1193_p8 = pneg %p1192_p1  ;;  %p1199_p6 = por %p1198_p13, %p1197_p11 }
  0x5a   : > { %p1200_p10 = pnand %p1199_p6, %p1193_p8 }
  0x5c   : > { %1203 = shalt.err (!%p1200_p10)
}
  0x5d   : > { %1084 = dma.hbm_to_vmem [thread:$0]  (!%p1635_p9), %s1644_s24, 128, %s1647_s22, %s1649_s20  }
  0x5e   : > { %s1464_s3 = smov [#allocation10]   ;;  %s1465_s21 = smov [#allocation11]  }
  0x5f   : > { %s282_s30 = sshll.u32 %s1464_s3, 4  ;;  %s295_s1 = sshll.u32 %s1465_s21, 4  ;;  %s283_s30 = int_to_ptr.vmem [resolvable:$true] %s282_s30  ;;  %s296_s1 = int_to_ptr.vmem [resolvable:$true] %s295_s1 }
  0x60   : > { %s1204_s23 = scalar_lea.hbm %s1948_s4, 512  ;;  %p1999_p8 = scmp.ne.s32.totalorder %s1992_s25, 0 }
  0x61   : > { %p1205_p4 = scmp.ne.s32.totalorder %s1948_s4, %s1204_s23  ;;  %p1211_p7 = scmp.lt.u32.totalorder %s1204_s23, %s1948_s4 }
  0x63   : > { %p1207_p11 = pnand %p1205_p4, %p1999_p8 }
  0x65   : > { %p1208_p13 = pneg %p1207_p11 }
  0x67   : > { %p1213_p2 = pnand %p1211_p7, %p1208_p13 }
  0x69   : > { %1216 = shalt.err (!%p1213_p2)
}
  0x6a   : > { %s1217_s22 = scalar_lea.vmem %s283_s30, 512  ;;  %p1225_p1 = scmp.lt.s32.totalorder %s283_s30, %s283_s30 }
  0x6b   : > { %p1218_p3 = scmp.ne.s32.totalorder %s283_s30, %s1217_s22  ;;  %p1226_p6 = scmp.lt.s32.totalorder %s1217_s22, %s1217_s22 }
  0x6d   : > { %p1220_p5 = pnand %p1218_p3, %p1999_p8  ;;  %p1227_p10 = por %p1226_p6, %p1225_p1 }
  0x6f   : > { %p1221_p12 = pneg %p1220_p5 }
  0x71   : > { %p1228_p9 = pnand %p1227_p10, %p1221_p12 }
  0x73   : > { %1231 = shalt.err (!%p1228_p9)
}
  0x74   : > { %p2000_p4 = scmp.ne.s32.totalorder %s1989_s16, 0  ;;  %s2001_s27 = smov 8  }
  0x75   : > { %s2002_s24 = smov 128   ;;  %s1232_s19 = scalar_lea.hbm %s1949_s5, 512 }
  0x76   : > { %1074 = dma.hbm_to_vmem [thread:$0]  (!%p2000_p4), %s1948_s4, 512, %s283_s30, [#allocation9], %s2002_s24, %s2002_s24, %s2001_s27  }
  0x77   : > { %p1233_p11 = scmp.ne.s32.totalorder %s1949_s5, %s1232_s19  ;;  %p1239_p7 = scmp.lt.u32.totalorder %s1232_s19, %s1949_s5 }
  0x79   : > { %p1235_p9 = pnand %p1233_p11, %p1999_p8 }
  0x7b   : > { %p1236_p13 = pneg %p1235_p9 }
  0x7d   : > { %p1241_p2 = pnand %p1239_p7, %p1236_p13 }
  0x7f   : > { %1244 = shalt.err (!%p1241_p2)
}
  0x80   : > { %s1245_s7 = scalar_lea.vmem %s296_s1, 512  ;;  %p1253_p1 = scmp.lt.s32.totalorder %s296_s1, %s296_s1 }
  0x81   : > { %p1246_p3 = scmp.ne.s32.totalorder %s296_s1, %s1245_s7  ;;  %p1254_p6 = scmp.lt.s32.totalorder %s1245_s7, %s1245_s7 }
  0x83   : > { %p1248_p5 = pnand %p1246_p3, %p1999_p8  ;;  %p1255_p10 = por %p1254_p6, %p1253_p1 }
  0x85   : > { %p1249_p12 = pneg %p1248_p5 }
  0x87   : > { %p1256_p0 = pnand %p1255_p10, %p1249_p12 }
  0x89   : > { %1259 = shalt.err (!%p1256_p0)
}
  0x8a   : > { %1077 = dma.hbm_to_vmem [thread:$0]  (!%p2000_p4), %s1949_s5, 512, %s296_s1, [#allocation12], %s2002_s24, %s2002_s24, %s2001_s27  }
  0x8b   : > { %s1725_s21 = scalar_lea.hbm %s1944_s0, %s1629_s10  ;;  %s313_s16 = scalar_lea.vmem [#allocation2], %s1633_s17 }
  0x8c   : > { %s320_s19 = sshll.u32 %s313_s16, 4  ;;  %s1734_s12 = scalar_lea.hbm %s1946_s2, %s1629_s10  ;;  %s1728_s19 = int_to_ptr.vmem [resolvable:$true] %s320_s19 }
  0x8d   : > { %s2003_s22 = sand.u32 1, %s1454_s29   ;;  %s1260_s27 = scalar_lea.hbm %s1725_s21, 128 }
  0x8e   : > { %s310_s1 = scalar_lea.sflag [#allocation3], %s2003_s22  ;;  %p1261_p0 = scmp.ne.s32.totalorder %s1725_s21, %s1260_s27 }
  0x8f   : > { %p2004_p8 = scmp.ne.s32.totalorder %s1998_s26, 0  ;;  %s1265_s30 = scalar_lea.hbm %s1944_s0, 256 }
  0x90   : > { %p1266_p9 = scmp.lt.u32.totalorder %s1725_s21, %s1944_s0  ;;  %p1267_p13 = scmp.lt.u32.totalorder %s1265_s30, %s1260_s27 }
  0x91   : > { %p1263_p4 = pnand %p1261_p0, %p2004_p8  ;;  %p1269_p2 = scmp.lt.u32.totalorder %s1260_s27, %s1725_s21 }
  0x92   : > { %p1268_p7 = por %p1267_p13, %p1266_p9 }
  0x93   : > { %p1264_p11 = pneg %p1263_p4 }
  0x94   : > { %p1270_p3 = por %p1269_p2, %p1268_p7 }
  0x96   : > { %p1271_p5 = pnand %p1270_p3, %p1264_p11 }
  0x98   : > { %1274 = shalt.err (!%p1271_p5)
}
  0x99   : > { %s1275_s10 = scalar_lea.vmem %s1728_s19, 128  ;;  %s1466_s3 = smov [#allocation2]  }
  0x9a   : > { %p1276_p12 = scmp.ne.s32.totalorder %s1728_s19, %s1275_s10  ;;  %s1280_s16 = sshll.u32 %s1466_s3, 4  ;;  %s1281_s16 = int_to_ptr.vmem [resolvable:$false] %s1280_s16 }
  0x9b   : > { %s1282_s23 = scalar_lea.vmem %s1281_s16, 256  ;;  %p1283_p10 = scmp.lt.s32.totalorder %s1728_s19, %s1281_s16 }
  0x9c   : > { %p1278_p1 = pnand %p1276_p12, %p2004_p8  ;;  %p1284_p0 = scmp.lt.s32.totalorder %s1282_s23, %s1275_s10 }
  0x9e   : > { %p1279_p6 = pneg %p1278_p1  ;;  %p1285_p4 = por %p1284_p0, %p1283_p10 }
  0xa0   : > { %p1286_p9 = pnand %p1285_p4, %p1279_p6 }
  0xa2   : > { %1289 = shalt.err (!%p1286_p9)
}
  0xa3   : > { %p2005_p11 = scmp.ne.s32.totalorder %s1996_s15, 0  ;;  %s349_s18 = scalar_lea.vmem [#allocation7], %s1633_s17 }
  0xa4   : > { %s356_s22 = sshll.u32 %s349_s18, 4  ;;  %s1290_s27 = scalar_lea.hbm %s1734_s12, 128  ;;  %s357_s22 = int_to_ptr.vmem [resolvable:$true] %s356_s22 }
  0xa5   : > { %1081 = dma.hbm_to_vmem [thread:$0]  (!%p2005_p11), %s1725_s21, 128, %s1728_s19, %s310_s1  }
  0xa6   : > { %p1291_p13 = scmp.ne.s32.totalorder %s1734_s12, %s1290_s27  ;;  %s1295_s30 = scalar_lea.hbm %s1946_s2, 256 }
  0xa7   : > { %p1296_p3 = scmp.lt.u32.totalorder %s1734_s12, %s1946_s2  ;;  %p1297_p5 = scmp.lt.u32.totalorder %s1295_s30, %s1290_s27 }
  0xa8   : > { %p1293_p7 = pnand %p1291_p13, %p2004_p8  ;;  %p1299_p1 = scmp.lt.u32.totalorder %s1290_s27, %s1734_s12 }
  0xa9   : > { %p1298_p12 = por %p1297_p5, %p1296_p3 }
  0xaa   : > { %p1294_p2 = pneg %p1293_p7 }
  0xab   : > { %p1300_p6 = por %p1299_p1, %p1298_p12 }
  0xad   : > { %p1301_p10 = pnand %p1300_p6, %p1294_p2 }
  0xaf   : > { %1304 = shalt.err (!%p1301_p10)
}
  0xb0   : > { %s1305_s17 = scalar_lea.vmem %s357_s22, 128  ;;  %s1467_s21 = smov [#allocation7]  }
  0xb1   : > { %p1306_p0 = scmp.ne.s32.totalorder %s357_s22, %s1305_s17  ;;  %s1310_s19 = sshll.u32 %s1467_s21, 4  ;;  %s1311_s19 = int_to_ptr.vmem [resolvable:$false] %s1310_s19 }
  0xb2   : > { %s1312_s1 = scalar_lea.vmem %s1311_s19, 256  ;;  %p1313_p13 = scmp.lt.s32.totalorder %s357_s22, %s1311_s19 }
  0xb3   : > { %p1308_p4 = pnand %p1306_p0, %p2004_p8  ;;  %p1314_p7 = scmp.lt.s32.totalorder %s1312_s1, %s1305_s17 }
  0xb5   : > { %p1309_p9 = pneg %p1308_p4  ;;  %p1315_p11 = por %p1314_p7, %p1313_p13 }
  0xb7   : > { %p1316_p3 = pnand %p1315_p11, %p1309_p9 }
  0xb9   : > { %1319 = shalt.err (!%p1316_p3)
}
  0xba   : > { %p2006_p5 = scmp.ne.s32.totalorder %s1996_s15, 0  ;;  %p2007_p2 = scmp.ne.s32.totalorder %s1988_s13, 0 }
  0xbb   : > { %s1781_s26 = sand.u32 (!%p2007_p2), 1, %s1450_s28   ;;  %p2008_p8 = scmp.ne.s32.totalorder (!%p2007_p2), %s1985_s11, 0 }
  0xbc   : > { %1087 = dma.hbm_to_vmem [thread:$0]  (!%p2006_p5), %s1734_s12, 128, %s357_s22, %s1649_s20  }
  0xbd   : > { %365 = sbr.rel (%p2007_p2) target bundleno = 491 (0x1eb), region = 44  ;;  %s1784_s10 = sshll.u32 (!%p2007_p2), %s1781_s26, 3 }
  0xbe   : > { %s368_s3 = scalar_lea.sflag (!%p2007_p2), [#allocation3], %s1781_s26  ;;  %s371_s16 = scalar_lea.vmem (!%p2007_p2), [#allocation2], %s1784_s10 }
  0xc4   : > { %1421 = dma.done.wait (%p2008_p8), %s368_s3, 128  }
  0xc5   : > { %1423 = vsyncadd (%p2008_p8), %s368_s3, 4294967168  ;;  %s376_s13 = sand.u32 1, %s1540_s9   ;;  %s380_s15 = scalar_lea.vmem [#allocation5], %s1784_s10 }
  0xc6   : > { %s377_s20 = scalar_lea.sflag [#allocation6], %s376_s13 }
  0xc7   : > { %1425 = dma.done.wait (%p2008_p8), %s377_s20, 256  }
  0xc8   : > { %1427 = vsyncadd (%p2008_p8), %s377_s20, 4294967040  ;;  %s389_s12 = scalar_lea.vmem [#allocation7], %s1784_s10  ;;  %p2009_p11 = scmp.eq.s32.totalorder %s1540_s9, 0 }
  0xca   : > { %1429 = dma.done.wait (%p2009_p11), [#allocation9], 1024   ;;  %p2010_p12 = pmov %p2009_p11 }
  0xcb   : > { %p2011_p1 = pmov %p2009_p11 }
  0xcc   : > { %1431 = vsyncadd (%p2010_p12), [#allocation9], 4294966272 }
  0xcd   : > { %1433 = dma.done.wait (%p2011_p1), [#allocation12], 512   ;;  %p2012_p6 = pmov %p2011_p1 }
  0xce   : > { %v1468_v0 = vmov 0.0|0.0   ;;  %vm1469_vm0 = vmmov 0   ;;  %v1470_v1 = vmov 0.0   ;;  %v455_v2 = vld [vmem:[#allocation8] sm:$0xff]  ;;  %v456_v3 = vld [vmem:[#allocation8 + $0x8] sm:$0xff]  ;;  %v457_v4 = vld [vmem:[#allocation8 + $0x10] sm:$0xff] }
  0xcf   : > { %1435 = vsyncadd (%p2012_p6), [#allocation12], 4294966784  ;;  %1026 = vmatprep.subr.bf16.mxu0 %v1468_v0  ;;  %1032 = vmatprep.subr.bf16.mxu1 %v1468_v0  ;;  %v1027_v5 = vpack.c.bf16 %v456_v3, %v455_v2  ;;  %v458_v6 = vld [vmem:[#allocation8 + $0x18] sm:$0xff]  ;;  %v535_v7 = vld [vmem:[#allocation10] sm:$0xff]  ;;  %vm459_vm1 = vcmask 261120   ;;  %s1822_s11 = sshll.u32 %s1540_s9, 7 }
  0xd0   : > { %1001 = vmatprep.mubr.msk.f32.mxu0 %vm1469_vm0, %v1470_v1  ;;  %1012 = vmatprep.mubr.msk.f32.mxu1 %vm1469_vm0, %v1470_v1  ;;  %v536_v8 = vld [vmem:[#allocation10 + $0x8] sm:$0xff]  ;;  %v1030_v10 = vpack.c.bf16 %v458_v6, %v457_v4  ;;  %v537_v11 = vld [vmem:[#allocation10 + $0x10] sm:$0xff]  ;;  %v538_v12 = vld [vmem:[#allocation10 + $0x18] sm:$0xff]  ;;  %s439_s23 = scalar_lea.vmem [#allocation13], %s1784_s10  ;;  %s446_s22 = scalar_lea.vmem [#allocation14], %s1784_s10 }
  0xd1   : > { %v1033_v9 = vpack.c.bf16 %v536_v8, %v535_v7  ;;  %1028 = vmatpush3.bf16.msra.mxu0 %v1027_v5  ;;  %v614_v13 = vld [vmem:[#allocation11] sm:$0xff]  ;;  %v615_v14 = vld [vmem:[#allocation11 + $0x8] sm:$0xff]  ;;  %v1036_v15 = vpack.c.bf16 %v538_v12, %v537_v11  ;;  %v454_v16 = vld [vmem:[%s371_s16] sm:$0xff]  ;;  %s716_s18 = sshll.u32 %s439_s23, 4  ;;  %s729_s27 = sshll.u32 %s446_s22, 4  ;;  %s1832_s18 = int_to_ptr.vmem [resolvable:$true] %s716_s18  ;;  %s1840_s27 = int_to_ptr.vmem [resolvable:$true] %s729_s27 }
  0xd2   : > { %1029 = vmatprep.subr.bf16.mxu0 %v1468_v0  ;;  %v1039_v17 = vpack.c.bf16 %v615_v14, %v614_v13  ;;  %v616_v18 = vld [vmem:[#allocation11 + $0x10] sm:$0xff]  ;;  %v617_v19 = vld [vmem:[#allocation11 + $0x18] sm:$0xff]  ;;  %v534_v20 = vld [vmem:[%s380_s15] sm:$0xff]  ;;  %s1830_s30 = scalar_lea.hbm %s1950_s6, %s1822_s11  ;;  %s2013_s17 = sld [smem:[#allocation30_spill]] }
  0xd3   : > { %1034 = vmatpush3.bf16.msra.mxu1 %v1033_v9  ;;  %v1042_v21 = vpack.c.bf16 %v617_v19, %v616_v18  ;;  %v613_v22 = vld [vmem:[%s389_s12] sm:$0xff]  ;;  %s693_s19 = scalar_lea.sflag [#allocation4], %s1781_s26  ;;  %s1320_s1 = scalar_lea.vmem %s1832_s18, 128 }
  0xd4   : > { %1035 = vmatprep.subr.bf16.mxu1 %v1468_v0  ;;  %p1321_p10 = scmp.ne.s32.totalorder %s1832_s18, %s1320_s1  ;;  %p2014_p0 = scmp.ne.s32.totalorder %s1995_s14, 0 }
  0xd5   : > { %1031 = vmatpush3.bf16.msra.mxu0 %v1030_v10  ;;  %s1471_s3 = smov [#allocation13]  }
  0xd6   : > { %1038 = vmatprep.subr.bf16.mxu0 %v1468_v0  ;;  %p1322_p4 = pnand %p1321_p10, %p2014_p0  ;;  %s1324_s16 = sshll.u32 %s1471_s3, 4  ;;  %s1325_s16 = int_to_ptr.vmem [resolvable:$false] %s1324_s16 }
  0xd7   : > { %1037 = vmatpush3.bf16.msra.mxu1 %v1036_v15  ;;  %s1326_s20 = scalar_lea.vmem %s1325_s16, 256  ;;  %p1327_p13 = scmp.lt.s32.totalorder %s1832_s18, %s1325_s16 }
  0xd8   : > { %1002 = vmatmul.mubr.msk.f32.vlgmr.msra.gmra.mrb[0].mxu0 %vm459_vm1, %v454_v16  ;;  %s1838_s21 = scalar_lea.hbm %s2013_s17, %s1822_s11  ;;  %p1323_p9 = pneg %p1322_p4 }
  0xd9   : > { %1040 = vmatpush3.bf16.msra.mxu0 %v1039_v17  ;;  %1023 = vmatprep.mubr.msk.f32.mxu0 %vm1469_vm0, %v1470_v1  ;;  %p1328_p7 = scmp.lt.s32.totalorder %s1326_s20, %s1320_s1 }
  0xda   : > { %1013 = vmatmul.mubr.msk.f32.vlgmr.msra.gmra.mrb[0].mxu1 %vm459_vm1, %v534_v20  ;;  %1041 = vmatprep.subr.bf16.mxu0 %v1468_v0 }
  0xdb   : > { %p1329_p3 = por %p1328_p7, %p1327_p13 }
  0xdd   : > { %1043 = vmatpush3.bf16.msra.mxu0 %v1042_v21  ;;  %p1330_p5 = pnand %p1329_p3, %p1323_p9 }
  0xe0   : > { %1024 = vmatmul.mubr.msk.f32.vlgmr.msra.gmra.mrb[2].mxu0 %vm459_vm1, %v613_v22 }
 0x1ab   : > { %v529_v23 = vpop.f32.mrb[0].mxu0 }
 0x1ac   : > { %533 = vst.msk [vmem:[%s439_s23] sm:$0xff] %vm459_vm1, %v529_v23  ;;  %v1003_v24 = vpop.f32.mrb[1].mxu0 }
 0x1ad   : > { %v608_v25 = vpop.f32.mrb[0].mxu1 }
 0x1ae   : > { %612 = vst.msk [vmem:[%s446_s22] sm:$0xff] %vm459_vm1, %v608_v25  ;;  %v1014_v26 = vpop.f32.mrb[1].mxu1 }
 0x1af   : > { %1333 = shalt.err (!%p1330_p5)
}
 0x1b0   : > { %s1334_s26 = scalar_lea.hbm %s1830_s30, 128  ;;  %s1338_s23 = scalar_lea.hbm %s1950_s6, 256 }
 0x1b1   : > { %p1335_p2 = scmp.ne.s32.totalorder %s1830_s30, %s1334_s26  ;;  %p1339_p12 = scmp.lt.u32.totalorder %s1830_s30, %s1950_s6 }
 0x1b2   : > { %p1340_p1 = scmp.lt.u32.totalorder %s1338_s23, %s1334_s26  ;;  %p1342_p10 = scmp.lt.u32.totalorder %s1334_s26, %s1830_s30 }
 0x1b3   : > { %p1336_p8 = pnand %p1335_p2, %p2014_p0 }
 0x1b4   : > { %p1341_p6 = por %p1340_p1, %p1339_p12 }
 0x1b5   : > { %p1337_p11 = pneg %p1336_p8 }
 0x1b6   : > { %p1343_p4 = por %p1342_p10, %p1341_p6 }
 0x1b8   : > { %p1344_p9 = pnand %p1343_p4, %p1337_p11 }
 0x1ba   : > { %1347 = shalt.err (!%p1344_p9)
}
 0x1bb   : > { %1062 = dma.vmem_to_hbm [thread:$0]  (%p2014_p0), %s1832_s18, 128, %s1830_s30, %s693_s19  }
 0x1bc   : > { %s1868_s7 = scalar_lea.sflag [#allocation15], %s376_s13  ;;  %s1348_s8 = scalar_lea.vmem %s1840_s27, 128 }
 0x1bd   : > { %p1349_p13 = scmp.ne.s32.totalorder %s1840_s27, %s1348_s8  ;;  %s1472_s25 = smov [#allocation14]  }
 0x1be   : > { %s1352_s1 = sshll.u32 %s1472_s25, 4  ;;  %s1353_s1 = int_to_ptr.vmem [resolvable:$false] %s1352_s1 }
 0x1bf   : > { %p1350_p7 = pnand %p1349_p13, %p2014_p0  ;;  %s1354_s3 = scalar_lea.vmem %s1353_s1, 256 }
 0x1c0   : > { %p1355_p5 = scmp.lt.s32.totalorder %s1840_s27, %s1353_s1  ;;  %p1356_p2 = scmp.lt.s32.totalorder %s1354_s3, %s1348_s8 }
 0x1c1   : > { %p1351_p3 = pneg %p1350_p7 }
 0x1c2   : > { %p1357_p8 = por %p1356_p2, %p1355_p5 }
 0x1c4   : > { %p1358_p11 = pnand %p1357_p8, %p1351_p3 }
 0x1c6   : > { %1361 = shalt.err (!%p1358_p11)
}
 0x1c7   : > { %s1362_s9 = scalar_lea.hbm %s1838_s21, 128  ;;  %s1366_s30 = scalar_lea.hbm %s2013_s17, 256 }
 0x1c8   : > { %p1363_p12 = scmp.ne.s32.totalorder %s1838_s21, %s1362_s9  ;;  %p1367_p10 = scmp.lt.u32.totalorder %s1838_s21, %s2013_s17 }
 0x1c9   : > { %p1368_p4 = scmp.lt.u32.totalorder %s1366_s30, %s1362_s9  ;;  %p1370_p13 = scmp.lt.u32.totalorder %s1362_s9, %s1838_s21 }
 0x1ca   : > { %p1364_p1 = pnand %p1363_p12, %p2014_p0 }
 0x1cb   : > { %p1369_p9 = por %p1368_p4, %p1367_p10 }
 0x1cc   : > { %p1365_p6 = pneg %p1364_p1 }
 0x1cd   : > { %p1371_p7 = por %p1370_p13, %p1369_p9 }
 0x1cf   : > { %p1372_p3 = pnand %p1371_p7, %p1365_p6 }
 0x1d1   : > { %1375 = shalt.err (!%p1372_p3)
}
 0x1d2   : > { %1063 = dma.vmem_to_hbm [thread:$0]  (%p2014_p0), %s1840_s27, 128, %s1838_s21, %s1868_s7   ;;  %v687_v27 = vpop.f32.mrb[2].mxu0 }
 0x1d3   : > { %s453_s20 = scalar_lea.vmem [#allocation16], %s1784_s10  ;;  %s2015_s23 = sld [smem:[#allocation31_spill]]  ;;  %v1025_v28 = vpop.f32.mrb[3].mxu0 }
 0x1d4   : > { %s742_s26 = sshll.u32 %s453_s20, 4  ;;  %691 = vst.msk [vmem:[%s453_s20] sm:$0xff] %vm459_vm1, %v687_v27  ;;  %s1473_s10 = smov [#allocation16]   ;;  %s1899_s26 = int_to_ptr.vmem [resolvable:$true] %s742_s26 }
 0x1d5   : > { %s1376_s24 = scalar_lea.vmem %s1899_s26, 128  ;;  %s1380_s27 = sshll.u32 %s1473_s10, 4  ;;  %s1381_s27 = int_to_ptr.vmem [resolvable:$false] %s1380_s27 }
 0x1d6   : > { %p1377_p5 = scmp.ne.s32.totalorder %s1899_s26, %s1376_s24  ;;  %s1382_s21 = scalar_lea.vmem %s1381_s27, 256 }
 0x1d7   : > { %p1383_p11 = scmp.lt.s32.totalorder %s1899_s26, %s1381_s27  ;;  %p1384_p12 = scmp.lt.s32.totalorder %s1382_s21, %s1376_s24 }
 0x1d8   : > { %p1378_p2 = pnand %p1377_p5, %p2014_p0 }
 0x1d9   : > { %s1897_s22 = scalar_lea.hbm %s2015_s23, %s1822_s11  ;;  %p1385_p1 = por %p1384_p12, %p1383_p11 }
 0x1da   : > { %p1379_p8 = pneg %p1378_p2 }
 0x1dc   : > { %p1386_p6 = pnand %p1385_p1, %p1379_p8 }
 0x1de   : > { %1389 = shalt.err (!%p1386_p6)
}
 0x1df   : > { %s1390_s11 = scalar_lea.hbm %s1897_s22, 128  ;;  %s1394_s1 = scalar_lea.hbm %s2015_s23, 256 }
 0x1e0   : > { %p1391_p10 = scmp.ne.s32.totalorder %s1897_s22, %s1390_s11  ;;  %p1395_p13 = scmp.lt.u32.totalorder %s1897_s22, %s2015_s23 }
 0x1e1   : > { %p1396_p7 = scmp.lt.u32.totalorder %s1394_s1, %s1390_s11  ;;  %p1398_p5 = scmp.lt.u32.totalorder %s1390_s11, %s1897_s22 }
 0x1e2   : > { %p1392_p4 = pnand %p1391_p10, %p2014_p0 }
 0x1e3   : > { %p1397_p3 = por %p1396_p7, %p1395_p13 }
 0x1e4   : > { %p1393_p9 = pneg %p1392_p4 }
 0x1e5   : > { %p1399_p2 = por %p1398_p5, %p1397_p3 }
 0x1e7   : > { %p1400_p8 = pnand %p1399_p2, %p1393_p9 }
 0x1e9   : > { %1403 = shalt.err (!%p1400_p8)
}
 0x1ea   : > { %1064 = dma.vmem_to_hbm [thread:$0]  (%p2014_p0), %s1899_s26, 128, %s1897_s22, %s1868_s7  }
 0x1eb PF: > { %s2016_s13 = sld [smem:[#allocation23_spill]]  ;;  %s2017_s18 = sld [smem:[#allocation25_spill]] }
 0x1ec   : > { %s2018_s30 = sld [smem:[#allocation24_spill]] }
 0x1f1   : > { %s754_s19 = sand.u32 1, %s2016_s13   ;;  %p2019_p11 = scmp.ne.s32.totalorder %s2017_s18, 0 }
 0x1f2   : > { %p2020_p12 = scmp.ge.s32.totalorder %s2018_s30, 2  ;;  %s755_s16 = scalar_lea.sflag [#allocation4], %s754_s19 }
 0x1f4   : > { %p1089_p1 = pnand %p2020_p12, %p2019_p11 }
 0x1f6   : > { %1437 = dma.done.wait (!%p1089_p1), %s755_s16, 128  }
 0x1f7   : > { %1439 = vsyncadd (!%p1089_p1), %s755_s16, 4294967168  ;;  %s2021_s20 = sadd.s32 4294967294, %s2018_s30  }
 0x1f8   : > { %s763_s15 = sand.u32 1, %s2021_s20  }
 0x1f9   : > { %s764_s12 = scalar_lea.sflag [#allocation15], %s763_s15 }
 0x1fa   : > { %1441 = dma.done.wait (!%p1089_p1), %s764_s12, 256  }
 0x1fb   : > { %1443 = vsyncadd (!%p1089_p1), %s764_s12, 4294967040  ;;  %s2022_s30 = sld [smem:[#allocation26_spill]]  ;;  %s2023_s14 = sld [smem:[#allocation27_spill]] }
 0x1fc   : > { %s2024_s27 = smov %s1450_s28  ;;  %s2025_s28 = smov %s1454_s29 }
 0x201   : > { %p30_p0 = scmp.ge.s32.totalorder %s2022_s30, 4   ;;  %s2026_s29 = smov %s2023_s14 }
 0x203   :  { %32 = sbr.rel (!%p30_p0) target bundleno = 16 (0x10), region = 157 }
 0x20a   :  { %778 = vsyncpa [#allocation3], 1 }
 0x20b   :  { %780 = vsyncpa [#allocation3 + $0x1], 1 }
 0x20c   :  { %781 = vsyncpa [#allocation6], 1 }
 0x20d   :  { %783 = vsyncpa [#allocation6 + $0x1], 1 }
 0x20e   :  { %784 = vsyncpa [#allocation9], 1 }
 0x20f   :  { %785 = vsyncpa [#allocation12], 1 }
 0x210   :  { %786 = vsyncpa [#allocation4], 1 }
 0x211   :  { %788 = vsyncpa [#allocation4 + $0x1], 1 }
 0x212   :  { %789 = vsyncpa [#allocation15], 1 }
 0x213   :  { %791 = vsyncpa [#allocation15 + $0x1], 1 }

</bundles_post_ra>
